<compile_context>
chip_gen: v6e
topology: v6e:2x2x1
jax: 0.10.0
libtpu: 0.0.40
codegen_flags: <defaults>
</compile_context>

<pallas_src>
import functools

import jax
import jax.numpy as jnp
from jax import lax
from jax.experimental import pallas as pl
from jax.experimental.pallas import tpu as pltpu


def _router_kernel(x_ref, w_ref, probs_ref, idx_ref, tpe_ref, *,
                   top_k, n_experts, n_tokens, tile_m):
    i = pl.program_id(0)

    # Native-dtype operands straight into the MXU, f32 accumulation.
    logits = jnp.dot(x_ref[...], w_ref[...],
                     preferred_element_type=jnp.float32)           # (TM, E) f32

    tm = logits.shape[0]
    e_iota = lax.broadcasted_iota(jnp.int32, (tm, n_experts), 1)

    # Iterative top-k (top_k small & static): argmax -> record -> mask out.
    # The per-step selection mask is reused for the tokens_per_expert histogram.
    work = logits
    chosen = jnp.zeros((tm, n_experts), jnp.bool_)
    score_cols = []
    idx_cols = []
    for _ in range(top_k):
        m = jnp.max(work, axis=-1, keepdims=True)                  # (TM, 1)
        is_max = work == m
        # first occurrence on ties (matches lax.top_k; typical torch.topk behavior)
        idx = jnp.min(jnp.where(is_max, e_iota, n_experts), axis=-1, keepdims=True)
        sel = e_iota == idx                                        # exact one-hot
        work = jnp.where(sel, -jnp.inf, work)
        chosen = jnp.logical_or(chosen, sel)                       # fused histogram mask
        score_cols.append(m)
        idx_cols.append(idx)

    scores = jnp.concatenate(score_cols, axis=-1)                  # (TM, K) f32
    idxs = jnp.concatenate(idx_cols, axis=-1).astype(jnp.int32)    # (TM, K)

    # softmax over the top-k scores in float32 (pre_softmax=False path).
    smax = jnp.max(scores, axis=-1, keepdims=True)
    ex = jnp.exp(scores - smax)
    probs = ex / jnp.sum(ex, axis=-1, keepdims=True)

    probs_ref[...] = probs.astype(probs_ref.dtype)
    idx_ref[...] = idxs

    # Per-tile tokens_per_expert partial (summed in the wrapper). Padded rows of
    # the ragged last tile are excluded via the row-validity mask.
    chosen_valid = chosen
    if n_tokens % tile_m != 0:
        row = i * tile_m + lax.broadcasted_iota(jnp.int32, (tm, 1), 0)
        chosen_valid = jnp.logical_and(chosen, row < n_tokens)
    counts = jnp.sum(chosen_valid.astype(jnp.float32), axis=0)     # (E,)
    tpe_ref[...] = counts.reshape(1, 1, n_experts)


def _round_up(x, m):
    return (x + m - 1) // m * m


def _pick_tile_m(n_tokens, h, n_experts, itemsize, budget_bytes=20 * 2**20):
    """Largest token tile (multiple of 8, <=1024) whose double-buffered x tile
    plus the (possibly double-buffered) weight fits a conservative VMEM budget
    — sized so it is safe on v7x's 64 MiB VMEM as well as v5e/v6e."""
    padded_tokens = _round_up(max(n_tokens, 1), 8)
    w_bytes = 2 * h * n_experts * itemsize
    avail = max(budget_bytes - w_bytes, 2 * 8 * h * itemsize)
    tile = avail // (2 * h * itemsize)            # double-buffered x rows dominate
    tile = int(min(tile, 1024, padded_tokens))
    return max(8, (tile // 8) * 8)


def top_k_router(x, gate_weight, top_k, tile_m=None):
    """x: (..., in_features); gate_weight: (n_experts, in_features) (torch layout).

    Returns (probs, indices, tokens_per_expert, aux_losses) with probs/indices
    flattened over tokens, matching TopKRouter.forward at module defaults.
    """
    h = x.shape[-1]
    x2d = x.reshape(-1, h)
    n_tokens = x2d.shape[0]
    n_experts = gate_weight.shape[0]
    out_dtype = x2d.dtype

    # Cast / transpose the weight once here (not per grid step in the kernel).
    w = gate_weight.T.astype(x2d.dtype)           # (H, E)

    itemsize = jnp.dtype(x2d.dtype).itemsize
    if tile_m is None:
        tile_m = _pick_tile_m(n_tokens, h, n_experts, itemsize)
    tile_m = max(8, (int(tile_m) // 8) * 8)
    n_tiles = pl.cdiv(n_tokens, tile_m)

    kernel = functools.partial(
        _router_kernel, top_k=top_k, n_experts=n_experts,
        n_tokens=n_tokens, tile_m=tile_m)

    def build(single_buffer_weight):
        w_kwargs = {"pipeline_mode": pl.Buffered(1)} if single_buffer_weight else {}
        return pl.pallas_call(
            kernel,
            out_shape=(
                jax.ShapeDtypeStruct((n_tokens, top_k), out_dtype),
                jax.ShapeDtypeStruct((n_tokens, top_k), jnp.int32),
                jax.ShapeDtypeStruct((n_tiles, 1, n_experts), jnp.float32),
            ),
            grid_spec=pltpu.PrefetchScalarGridSpec(
                num_scalar_prefetch=0,
                grid=(n_tiles,),
                in_specs=[
                    pl.BlockSpec((tile_m, h), lambda i: (i, 0)),
                    # grid-invariant weight block (constant index -> fetched once)
                    pl.BlockSpec((h, n_experts), lambda i: (0, 0), **w_kwargs),
                ],
                out_specs=[
                    # small last-dim (top_k) outputs: lane-padded but negligible
                    # traffic vs the x stream (review's accepted fallback).
                    pl.BlockSpec((tile_m, top_k), lambda i: (i, 0)),
                    pl.BlockSpec((tile_m, top_k), lambda i: (i, 0)),
                    # per-tile histogram partials -> no cross-iteration state.
                    pl.BlockSpec((1, 1, n_experts), lambda i: (i, 0, 0)),
                ],
            ),
            compiler_params=pltpu.CompilerParams(
                dimension_semantics=("parallel",),      # megacore-friendly (v7x)
                vmem_limit_bytes=64 * 1024 * 1024,      # raise v5e/v6e scoped default
            ),
        )

    try:
        probs, idxs, tpe_parts = build(True)(x2d, w)
    except Exception:
        # pl.Buffered(1) (single-buffered weight) not accepted by this
        # jax build / backend -> fall back to default double buffering.
        probs, idxs, tpe_parts = build(False)(x2d, w)

    tokens_per_expert = jnp.sum(tpe_parts, axis=(0, 1))             # (n_experts,)

    # aux_losses: empty at defaults (z_loss=0, load_balance_loss=0, eval mode).
    # TODO(synk): training-mode router-z-loss / load-balance-loss would be extra
    # scalar reductions over the full logits; omitted since defaults make them None.
    return probs, idxs, tokens_per_expert, {}


def _reference(x, gate_weight, top_k):
    logits = x.astype(jnp.float32) @ gate_weight.T.astype(jnp.float32)
    scores, idxs = lax.top_k(logits, top_k)
    probs = jax.nn.softmax(scores.astype(jnp.float32), axis=-1).astype(x.dtype)
    n_experts = gate_weight.shape[0]
    tpe = jnp.sum(
        (idxs[..., None] == jnp.arange(n_experts)[None, None, :]).astype(jnp.float32),
        axis=(0, 1),
    )
    return probs, idxs.astype(jnp.int32), tpe


if __name__ == "__main__":
    batch, seq, hidden = 2, 8, 32
    n_experts, top_k = 8, 2

    key = jax.random.PRNGKey(0)
    kx, kw = jax.random.split(key)
    x = jax.random.normal(kx, (batch, seq, hidden), dtype=jnp.float32)
    # deterministic gate init (nn.Linear-style uniform bound)
    bound = 1.0 / (hidden ** 0.5)
    gate_weight = jax.random.uniform(
        kw, (n_experts, hidden), minval=-bound, maxval=bound, dtype=jnp.float32
    )

    probs, idxs, tokens_per_expert, aux = top_k_router(x, gate_weight, top_k)
    jax.block_until_ready((probs, idxs, tokens_per_expert))

    x_flat = x.reshape(-1, hidden)
    ref_probs, ref_idxs, ref_tpe = _reference(x_flat, gate_weight, top_k)
    assert probs.shape == (batch * seq, top_k)
    assert idxs.shape == (batch * seq, top_k)
    assert tokens_per_expert.shape == (n_experts,)
    assert jnp.allclose(probs, ref_probs, atol=1e-5)
    assert jnp.array_equal(idxs, ref_idxs)
    assert jnp.allclose(tokens_per_expert, ref_tpe)
    assert aux == {}

    # Ragged case: n_tokens not a multiple of tile_m exercises the cdiv grid,
    # masked boundary stores and the row-validity mask on tokens_per_expert.
    kx2 = jax.random.split(kx)[0]
    x_rag = jax.random.normal(kx2, (20, hidden), dtype=jnp.float32)
    p2, i2, t2, _ = top_k_router(x_rag, gate_weight, top_k, tile_m=8)
    jax.block_until_ready((p2, i2, t2))
    rp2, ri2, rt2 = _reference(x_rag, gate_weight, top_k)
    assert jnp.allclose(p2, rp2, atol=1e-5)
    assert jnp.array_equal(i2, ri2)
    assert jnp.allclose(t2, rt2)

    print("KERNEL_OK")
</pallas_src>

<mosaic_0001>
module attributes {stable_mosaic.version = 11 : i64} {
  func.func @_router_kernel(%arg0: i32, %arg1: memref<16x32xf32, #tpu.memory_space<vmem>>, %arg2: memref<32x8xf32, #tpu.memory_space<vmem>>, %arg3: memref<16x2xf32, #tpu.memory_space<vmem>>, %arg4: memref<16x2xi32, #tpu.memory_space<vmem>>, %arg5: memref<1x1x8xf32, #tpu.memory_space<vmem>>) attributes {dimension_semantics = [#tpu.dimension_semantics<parallel>], iteration_bounds = array<i64: 1>, scalar_prefetch = 0 : i64, scratch_operands = 0 : i64, tpu.core_type = #tpu.core_type<tc>, window_params = [{transform_indices = @transform_0, window_bounds = array<i64: 16, 32>}, {pipeline_mode = #tpu.pipeline_mode<synchronous>, transform_indices = @transform_1, window_bounds = array<i64: 32, 8>}, {transform_indices = @transform_2, window_bounds = array<i64: 16, 2>}, {transform_indices = @transform_3, window_bounds = array<i64: 16, 2>}, {transform_indices = @transform_4, window_bounds = array<i64: 1, 1, 8>}]} {
    %c0 = arith.constant 0 : index
    %c0_0 = arith.constant 0 : index
    %0 = vector.load %arg1[%c0, %c0_0] : memref<16x32xf32, #tpu.memory_space<vmem>>, vector<16x32xf32>
    %c0_1 = arith.constant 0 : index
    %c0_2 = arith.constant 0 : index
    %1 = vector.load %arg2[%c0_1, %c0_2] : memref<32x8xf32, #tpu.memory_space<vmem>>, vector<32x8xf32>
    %cst = arith.constant dense<0.000000e+00> : vector<16x8xf32>
    %2 = tpu.matmul %0, %1, %cst {dimension_numbers = #tpu.dot_dimension_numbers<[1], [0], [0], [1], [0, 0, 1, 1], [], []>} : vector<16x32xf32>, vector<32x8xf32>, vector<16x8xf32> -> vector<16x8xf32>
    %3 = tpu.iota {dimensions = array<i32: 1>} : vector<16x8xi32>
    %false = arith.constant false
    %4 = vector.broadcast %false : i1 to vector<16x8xi1>
    %cst_3 = arith.constant dense<0xFF800000> : vector<16xf32>
    %5 = vector.multi_reduction <maximumf>, %2, %cst_3 [1] : vector<16x8xf32> to vector<16xf32>
    %6 = vector.shape_cast %5 : vector<16xf32> to vector<16x1xf32>
    %7 = vector.broadcast %6 : vector<16x1xf32> to vector<16x8xf32>
    %8 = arith.cmpf oeq, %2, %7 : vector<16x8xf32>
    %c8_i32 = arith.constant 8 : i32
    %9 = vector.broadcast %c8_i32 : i32 to vector<16x8xi32>
    %10 = arith.select %8, %3, %9 : vector<16x8xi1>, vector<16x8xi32>
    %cst_4 = arith.constant dense<2147483647> : vector<16xi32>
    %11 = vector.multi_reduction <minsi>, %10, %cst_4 [1] : vector<16x8xi32> to vector<16xi32>
    %12 = vector.shape_cast %11 : vector<16xi32> to vector<16x1xi32>
    %13 = vector.broadcast %12 : vector<16x1xi32> to vector<16x8xi32>
    %14 = arith.cmpi eq, %3, %13 : vector<16x8xi32>
    %cst_5 = arith.constant 0xFF800000 : f32
    %15 = vector.broadcast %cst_5 : f32 to vector<16x8xf32>
    %16 = arith.select %14, %15, %2 : vector<16x8xi1>, vector<16x8xf32>
    %17 = arith.ori %4, %14 : vector<16x8xi1>
    %cst_6 = arith.constant dense<0xFF800000> : vector<16xf32>
    %18 = vector.multi_reduction <maximumf>, %16, %cst_6 [1] : vector<16x8xf32> to vector<16xf32>
    %19 = vector.shape_cast %18 : vector<16xf32> to vector<16x1xf32>
    %20 = vector.broadcast %19 : vector<16x1xf32> to vector<16x8xf32>
    %21 = arith.cmpf oeq, %16, %20 : vector<16x8xf32>
    %c8_i32_7 = arith.constant 8 : i32
    %22 = vector.broadcast %c8_i32_7 : i32 to vector<16x8xi32>
    %23 = arith.select %21, %3, %22 : vector<16x8xi1>, vector<16x8xi32>
    %cst_8 = arith.constant dense<2147483647> : vector<16xi32>
    %24 = vector.multi_reduction <minsi>, %23, %cst_8 [1] : vector<16x8xi32> to vector<16xi32>
    %25 = vector.shape_cast %24 : vector<16xi32> to vector<16x1xi32>
    %26 = vector.broadcast %25 : vector<16x1xi32> to vector<16x8xi32>
    %27 = arith.cmpi eq, %3, %26 : vector<16x8xi32>
    %28 = arith.ori %17, %27 : vector<16x8xi1>
    %29 = tpu.concatenate %6, %19 in 1 : vector<16x1xf32>, vector<16x1xf32> -> vector<16x2xf32>
    %30 = tpu.concatenate %12, %25 in 1 : vector<16x1xi32>, vector<16x1xi32> -> vector<16x2xi32>
    %cst_9 = arith.constant dense<0xFF800000> : vector<16xf32>
    %31 = vector.multi_reduction <maximumf>, %29, %cst_9 [1] : vector<16x2xf32> to vector<16xf32>
    %32 = vector.shape_cast %31 : vector<16xf32> to vector<16x1xf32>
    %33 = vector.broadcast %32 : vector<16x1xf32> to vector<16x2xf32>
    %34 = arith.subf %29, %33 : vector<16x2xf32>
    %35 = math.exp %34 : vector<16x2xf32>
    %cst_10 = arith.constant dense<0.000000e+00> : vector<16xf32>
    %36 = vector.multi_reduction <add>, %35, %cst_10 [1] : vector<16x2xf32> to vector<16xf32>
    %37 = vector.shape_cast %36 : vector<16xf32> to vector<16x1xf32>
    %38 = vector.broadcast %37 : vector<16x1xf32> to vector<16x2xf32>
    %39 = arith.divf %35, %38 : vector<16x2xf32>
    %c0_11 = arith.constant 0 : index
    %c0_12 = arith.constant 0 : index
    %40 = vector.load %arg3[%c0_11, %c0_12] : memref<16x2xf32, #tpu.memory_space<vmem>>, vector<16x2xf32>
    tpu.vector_store %arg3[%c0_11, %c0_12], %39 {strides = array<i32>} : memref<16x2xf32, #tpu.memory_space<vmem>>, vector<16x2xf32>,
    %c0_13 = arith.constant 0 : index
    %c0_14 = arith.constant 0 : index
    %41 = vector.load %arg4[%c0_13, %c0_14] : memref<16x2xi32, #tpu.memory_space<vmem>>, vector<16x2xi32>
    tpu.vector_store %arg4[%c0_13, %c0_14], %30 {strides = array<i32>} : memref<16x2xi32, #tpu.memory_space<vmem>>, vector<16x2xi32>,
    %42 = arith.extui %28 : vector<16x8xi1> to vector<16x8xi32>
    %43 = arith.sitofp %42 : vector<16x8xi32> to vector<16x8xf32>
    %cst_15 = arith.constant dense<0.000000e+00> : vector<8xf32>
    %44 = vector.multi_reduction <add>, %43, %cst_15 [0] : vector<16x8xf32> to vector<8xf32>
    %45 = vector.shape_cast %44 : vector<8xf32> to vector<1x1x8xf32>
    %c0_16 = arith.constant 0 : index
    %c0_17 = arith.constant 0 : index
    %c0_18 = arith.constant 0 : index
    %46 = vector.load %arg5[%c0_16, %c0_17, %c0_18] : memref<1x1x8xf32, #tpu.memory_space<vmem>>, vector<1x1x8xf32>
    tpu.vector_store %arg5[%c0_16, %c0_17, %c0_18], %45 {strides = array<i32>} : memref<1x1x8xf32, #tpu.memory_space<vmem>>, vector<1x1x8xf32>,
    return
  }
  func.func @transform_0(%arg0: i32) -> (i32, i32) {
    %c0_i32 = arith.constant 0 : i32
    %c0_i32_0 = arith.constant 0 : i32
    return %arg0, %c0_i32 : i32, i32
  }
  func.func @transform_1(%arg0: i32) -> (i32, i32) {
    %c0_i32 = arith.constant 0 : i32
    %c0_i32_0 = arith.constant 0 : i32
    %c0_i32_1 = arith.constant 0 : i32
    return %c0_i32, %c0_i32_0 : i32, i32
  }
  func.func @transform_2(%arg0: i32) -> (i32, i32) {
    %c0_i32 = arith.constant 0 : i32
    %c0_i32_0 = arith.constant 0 : i32
    return %arg0, %c0_i32 : i32, i32
  }
  func.func @transform_3(%arg0: i32) -> (i32, i32) {
    %c0_i32 = arith.constant 0 : i32
    %c0_i32_0 = arith.constant 0 : i32
    return %arg0, %c0_i32 : i32, i32
  }
  func.func @transform_4(%arg0: i32) -> (i32, i32, i32) {
    %c0_i32 = arith.constant 0 : i32
    %c0_i32_0 = arith.constant 0 : i32
    %c0_i32_1 = arith.constant 0 : i32
    return %arg0, %c0_i32, %c0_i32_0 : i32, i32, i32
  }
}

module attributes {stable_mosaic.version = 11 : i64} {
  func.func @_router_kernel(%arg0: i32, %arg1: memref<16x32xf32, #tpu.memory_space<vmem>>, %arg2: memref<32x8xf32, #tpu.memory_space<vmem>>, %arg3: memref<16x2xf32, #tpu.memory_space<vmem>>, %arg4: memref<16x2xi32, #tpu.memory_space<vmem>>, %arg5: memref<1x1x8xf32, #tpu.memory_space<vmem>>) attributes {dimension_semantics = [#tpu.dimension_semantics<parallel>], iteration_bounds = array<i64: 1>, scalar_prefetch = 0 : i64, scratch_operands = 0 : i64, tpu.core_type = #tpu.core_type<tc>, window_params = [{transform_indices = @transform_0, window_bounds = array<i64: 16, 32>}, {pipeline_mode = #tpu.pipeline_mode<synchronous>, transform_indices = @transform_1, window_bounds = array<i64: 32, 8>}, {transform_indices = @transform_2, window_bounds = array<i64: 16, 2>}, {transform_indices = @transform_3, window_bounds = array<i64: 16, 2>}, {transform_indices = @transform_4, window_bounds = array<i64: 1, 1, 8>}]} {
    %c0 = arith.constant 0 : index
    %c0_0 = arith.constant 0 : index
    %0 = vector.load %arg1[%c0, %c0_0] : memref<16x32xf32, #tpu.memory_space<vmem>>, vector<16x32xf32>
    %c0_1 = arith.constant 0 : index
    %c0_2 = arith.constant 0 : index
    %1 = vector.load %arg2[%c0_1, %c0_2] : memref<32x8xf32, #tpu.memory_space<vmem>>, vector<32x8xf32>
    %cst = arith.constant dense<0.000000e+00> : vector<16x8xf32>
    %2 = tpu.matmul %0, %1, %cst {dimension_numbers = #tpu.dot_dimension_numbers<[1], [0], [0], [1], [0, 0, 1, 1], [], []>} : vector<16x32xf32>, vector<32x8xf32>, vector<16x8xf32> -> vector<16x8xf32>
    %3 = tpu.iota {dimensions = array<i32: 1>} : vector<16x8xi32>
    %false = arith.constant false
    %4 = vector.broadcast %false : i1 to vector<16x8xi1>
    %cst_3 = arith.constant dense<0xFF800000> : vector<16xf32>
    %5 = vector.multi_reduction <maximumf>, %2, %cst_3 [1] : vector<16x8xf32> to vector<16xf32>
    %6 = vector.shape_cast %5 : vector<16xf32> to vector<16x1xf32>
    %7 = vector.broadcast %6 : vector<16x1xf32> to vector<16x8xf32>
    %8 = arith.cmpf oeq, %2, %7 : vector<16x8xf32>
    %c8_i32 = arith.constant 8 : i32
    %9 = vector.broadcast %c8_i32 : i32 to vector<16x8xi32>
    %10 = arith.select %8, %3, %9 : vector<16x8xi1>, vector<16x8xi32>
    %cst_4 = arith.constant dense<2147483647> : vector<16xi32>
    %11 = vector.multi_reduction <minsi>, %10, %cst_4 [1] : vector<16x8xi32> to vector<16xi32>
    %12 = vector.shape_cast %11 : vector<16xi32> to vector<16x1xi32>
    %13 = vector.broadcast %12 : vector<16x1xi32> to vector<16x8xi32>
    %14 = arith.cmpi eq, %3, %13 : vector<16x8xi32>
    %cst_5 = arith.constant 0xFF800000 : f32
    %15 = vector.broadcast %cst_5 : f32 to vector<16x8xf32>
    %16 = arith.select %14, %15, %2 : vector<16x8xi1>, vector<16x8xf32>
    %17 = arith.ori %4, %14 : vector<16x8xi1>
    %cst_6 = arith.constant dense<0xFF800000> : vector<16xf32>
    %18 = vector.multi_reduction <maximumf>, %16, %cst_6 [1] : vector<16x8xf32> to vector<16xf32>
    %19 = vector.shape_cast %18 : vector<16xf32> to vector<16x1xf32>
    %20 = vector.broadcast %19 : vector<16x1xf32> to vector<16x8xf32>
    %21 = arith.cmpf oeq, %16, %20 : vector<16x8xf32>
    %c8_i32_7 = arith.constant 8 : i32
    %22 = vector.broadcast %c8_i32_7 : i32 to vector<16x8xi32>
    %23 = arith.select %21, %3, %22 : vector<16x8xi1>, vector<16x8xi32>
    %cst_8 = arith.constant dense<2147483647> : vector<16xi32>
    %24 = vector.multi_reduction <minsi>, %23, %cst_8 [1] : vector<16x8xi32> to vector<16xi32>
    %25 = vector.shape_cast %24 : vector<16xi32> to vector<16x1xi32>
    %26 = vector.broadcast %25 : vector<16x1xi32> to vector<16x8xi32>
    %27 = arith.cmpi eq, %3, %26 : vector<16x8xi32>
    %28 = arith.ori %17, %27 : vector<16x8xi1>
    %29 = tpu.concatenate %6, %19 in 1 : vector<16x1xf32>, vector<16x1xf32> -> vector<16x2xf32>
    %30 = tpu.concatenate %12, %25 in 1 : vector<16x1xi32>, vector<16x1xi32> -> vector<16x2xi32>
    %cst_9 = arith.constant dense<0xFF800000> : vector<16xf32>
    %31 = vector.multi_reduction <maximumf>, %29, %cst_9 [1] : vector<16x2xf32> to vector<16xf32>
    %32 = vector.shape_cast %31 : vector<16xf32> to vector<16x1xf32>
    %33 = vector.broadcast %32 : vector<16x1xf32> to vector<16x2xf32>
    %34 = arith.subf %29, %33 : vector<16x2xf32>
    %35 = math.exp %34 : vector<16x2xf32>
    %cst_10 = arith.constant dense<0.000000e+00> : vector<16xf32>
    %36 = vector.multi_reduction <add>, %35, %cst_10 [1] : vector<16x2xf32> to vector<16xf32>
    %37 = vector.shape_cast %36 : vector<16xf32> to vector<16x1xf32>
    %38 = vector.broadcast %37 : vector<16x1xf32> to vector<16x2xf32>
    %39 = arith.divf %35, %38 : vector<16x2xf32>
    %c0_11 = arith.constant 0 : index
    %c0_12 = arith.constant 0 : index
    %40 = vector.load %arg3[%c0_11, %c0_12] : memref<16x2xf32, #tpu.memory_space<vmem>>, vector<16x2xf32>
    tpu.vector_store %arg3[%c0_11, %c0_12], %39 {strides = array<i32>} : memref<16x2xf32, #tpu.memory_space<vmem>>, vector<16x2xf32>,
    %c0_13 = arith.constant 0 : index
    %c0_14 = arith.constant 0 : index
    %41 = vector.load %arg4[%c0_13, %c0_14] : memref<16x2xi32, #tpu.memory_space<vmem>>, vector<16x2xi32>
    tpu.vector_store %arg4[%c0_13, %c0_14], %30 {strides = array<i32>} : memref<16x2xi32, #tpu.memory_space<vmem>>, vector<16x2xi32>,
    %42 = arith.extui %28 : vector<16x8xi1> to vector<16x8xi32>
    %43 = arith.sitofp %42 : vector<16x8xi32> to vector<16x8xf32>
    %cst_15 = arith.constant dense<0.000000e+00> : vector<8xf32>
    %44 = vector.multi_reduction <add>, %43, %cst_15 [0] : vector<16x8xf32> to vector<8xf32>
    %45 = vector.shape_cast %44 : vector<8xf32> to vector<1x1x8xf32>
    %c0_16 = arith.constant 0 : index
    %c0_17 = arith.constant 0 : index
    %c0_18 = arith.constant 0 : index
    %46 = vector.load %arg5[%c0_16, %c0_17, %c0_18] : memref<1x1x8xf32, #tpu.memory_space<vmem>>, vector<1x1x8xf32>
    tpu.vector_store %arg5[%c0_16, %c0_17, %c0_18], %45 {strides = array<i32>} : memref<1x1x8xf32, #tpu.memory_space<vmem>>, vector<1x1x8xf32>,
    return
  }
  func.func @transform_0(%arg0: i32) -> (i32, i32) {
    %c0_i32 = arith.constant 0 : i32
    %c0_i32_0 = arith.constant 0 : i32
    return %arg0, %c0_i32 : i32, i32
  }
  func.func @transform_1(%arg0: i32) -> (i32, i32) {
    %c0_i32 = arith.constant 0 : i32
    %c0_i32_0 = arith.constant 0 : i32
    %c0_i32_1 = arith.constant 0 : i32
    return %c0_i32, %c0_i32_0 : i32, i32
  }
  func.func @transform_2(%arg0: i32) -> (i32, i32) {
    %c0_i32 = arith.constant 0 : i32
    %c0_i32_0 = arith.constant 0 : i32
    return %arg0, %c0_i32 : i32, i32
  }
  func.func @transform_3(%arg0: i32) -> (i32, i32) {
    %c0_i32 = arith.constant 0 : i32
    %c0_i32_0 = arith.constant 0 : i32
    return %arg0, %c0_i32 : i32, i32
  }
  func.func @transform_4(%arg0: i32) -> (i32, i32, i32) {
    %c0_i32 = arith.constant 0 : i32
    %c0_i32_0 = arith.constant 0 : i32
    %c0_i32_1 = arith.constant 0 : i32
    return %arg0, %c0_i32, %c0_i32_0 : i32, i32, i32
  }
}

</mosaic_0001>

<bundles_post_ra>
// kernel: tpu_custom_call.1
= control target key start
LH: loop header
LB: loop body
LE: loop exit
PB: predicated region body
PF: predicated region fallthrough
CT: control target
= control target key end

     0   :  { %vm21_vm0 = vcmask 261120   ;;  %s428_s0 = inlined_call_operand.vmem [shape: f32[16,32], index: 0, kind: input, shape index: {}]   ;;  %s429_s1 = inlined_call_operand.vmem [shape: f32[32,8], index: 1, kind: input, shape index: {}]   ;;  %s430_s2 = inlined_call_operand.vmem [shape: f32[16,2], index: 2, kind: output, shape index: {0}]   ;;  %s431_s3 = inlined_call_operand.vmem [shape: s32[16,2], index: 3, kind: output, shape index: {1}]   ;;  %s432_s4 = inlined_call_operand.hbm [shape: f32[1,1,8], index: 4, kind: output, shape index: {2}]  }
   0x1   :  { %v20_v0 = vld [vmem:[%s429_s1 + $0x18] sm:$0xff]  ;;  %v19_v1 = vld [vmem:[%s429_s1 + $0x10] sm:$0xff]  ;;  %v15_v2 = vld [vmem:[%s428_s0] sm:$0xff] }
   0x2   :  { %273 = vmatprep.subr.mxu0 %v20_v0  ;;  %v18_v3 = vld [vmem:[%s429_s1 + $0x8] sm:$0xff]  ;;  %281 = vmatprep.mubr.msk.f32.mxu0 %vm21_vm0, %v15_v2 }
   0x3   :  { %274 = vmatpush3.msra.mxu0 %v20_v0 }
   0x4   :  { %10 = vsyncpa [#allocation3], 0  ;;  %275 = vmatprep.subr.mxu0 %v19_v1  ;;  %v17_v4 = vld [vmem:[%s429_s1] sm:$0xff]  ;;  %v16_v5 = vld [vmem:[%s428_s0 + $0x8] sm:$0xff]  ;;  %vm105_vm1 = vcmask 64512   ;;  %v103_v10 = vlaneseq  ;;  %vm194_vm8 = vcmask 7168  }
   0x5   :  { %276 = vmatpush3.msra.mxu0 %v19_v1  ;;  %vm199_vm9 = vcmask 15360   ;;  %s317_s29 = smov [#allocation2]  }
   0x6   :  { %277 = vmatprep.subr.mxu0 %v18_v3  ;;  %v363_v11 = vand.u32 127, %v103_v10  ;;  %s251_s30 = sshll.u32 %s317_s29, 4  ;;  %s252_s30 = int_to_ptr.vmem [resolvable:$true] %s251_s30 }
   0x7   :  { %278 = vmatpush3.msra.mxu0 %v18_v3  ;;  %s298_s5 = scalar_lea.vmem %s252_s30, 32  ;;  %p299_p1 = scmp.lt.s32.totalorder %s252_s30, %s252_s30 }
   0x8   :  { %279 = vmatprep.subr.mxu0 %v17_v4 }
   0x9   :  { %280 = vmatpush3.msra.mxu0 %v17_v4 }
   0xa   :  { %282 = vmatmul.mubr.msk.f32.vlgmr.msra.gmra.mxu0 %vm21_vm0, %v16_v5 }
  0xca   :  { %v283_v6 = vpop.f32.mrf.mxu0 }
  0xcb   :  { %v109_v9 = vsel %vm105_vm1, %v283_v6, -inf }
  0xcc   :  { %v94_v7 = vpop.f32.mrf.mxu0 }
  0xcd   :  { %v106_v8 = vsel %vm105_vm1, %v94_v7, -inf }
  0xce   :  { %107 = vmax.xlane.f32.xlu0 %v106_v8 }
  0xd2   :  { %110 = vmax.xlane.f32.xlu0 %v109_v9 }
 0x157   :  { %v108_v12 = vpop.xlane.xlu0 %107 }
 0x158   :  { %vm112_vm2 = vcmp.eq.f32.partialorder %v94_v7, %v108_v12 }
 0x159   :  { %v114_v13 = vsel %vm112_vm2, %v363_v11, 8 }
 0x15a   :  { %v116_v14 = vsel %vm105_vm1, %v114_v13, 2147483647 }
 0x15b   :  { %v111_v15 = vpop.xlane.xlu0 %110  ;;  %v118_v16 = vshra.s32 %v116_v14, 16  ;;  %v117_v22 = vand.u32 65535, %v116_v14 }
 0x15c   :  { %vm113_vm3 = vcmp.eq.f32.partialorder %v283_v6, %v111_v15 }
 0x15d   :  { %v115_v17 = vsel %vm113_vm3, %v363_v11, 8  ;;  %v120_v18 = vcvt.s32.f32 %v118_v16  ;;  %v119_v24 = vcvt.s32.f32 %v117_v22  ;;  %vm239_vm3 = vcmask 57344  }
 0x15e   :  { %v131_v19 = vsel %vm105_vm1, %v115_v17, 2147483647 }
 0x15f   :  { %121 = vmin.xlane.f32.xlu1 %v120_v18  ;;  %v133_v20 = vshra.s32 %v131_v19, 16  ;;  %v132_v25 = vand.u32 65535, %v131_v19 }
 0x161   :  { %v135_v21 = vcvt.s32.f32 %v133_v20  ;;  %v134_v28 = vcvt.s32.f32 %v132_v25 }
 0x163   :  { %136 = vmin.xlane.f32.xlu1 %v135_v21 }
 0x1e8   :  { %v122_v23 = vpop.xlane.xlu1 %121 }
 0x1e9   :  { %vm123_vm4 = vcmp.eq.f32.partialorder %v120_v18, %v122_v23  ;;  %v128_v30 = vcvt.f32.s32 %v122_v23 }
 0x1ea   :  { %v124_v26 = vsel %vm123_vm4, %v119_v24, inf  ;;  %v316_v24 = vmov 0.0  }
 0x1eb   :  { %125 = vmin.xlane.f32.xlu0 %v124_v26  ;;  %v129_v32 = vshll.u32 %v128_v30, 16 }
 0x1ec   :  { %v137_v27 = vpop.xlane.xlu1 %136 }
 0x1ed   :  { %vm138_vm5 = vcmp.eq.f32.partialorder %v135_v21, %v137_v27  ;;  %v143_v33 = vcvt.f32.s32 %v137_v27 }
 0x1ee   :  { %v139_v29 = vsel %vm138_vm5, %v134_v28, inf }
 0x1ef   :  { %140 = vmin.xlane.f32.xlu1 %v139_v29  ;;  %v144_v37 = vshll.u32 %v143_v33, 16 }
 0x274   :  { %v126_v31 = vpop.xlane.xlu0 %125 }
 0x275   :  { %v127_v34 = vcvt.f32.s32 %v126_v31 }
 0x277   :  { %v369_v35 = vadd.s32 %v129_v32, %v127_v34 }
 0x278   :  { %v141_v36 = vpop.xlane.xlu1 %140 }
 0x279   :  { %v142_v38 = vcvt.f32.s32 %v141_v36  ;;  %vm146_vm6 = vcmp.eq.s32.totalorder %v363_v11, %v369_v35 }
 0x27a   :  { %v148_v39 = vsel %vm146_vm6, -inf, %v94_v7 }
 0x27b   :  { %v376_v40 = vadd.s32 %v144_v37, %v142_v38  ;;  %v150_v41 = vsel %vm105_vm1, %v148_v39, -inf }
 0x27c   :  { %151 = vmax.xlane.f32.xlu0 %v150_v41 }
 0x27d   :  { %vm147_vm7 = vcmp.eq.s32.totalorder %v363_v11, %v376_v40 }
 0x27e   :  { %v149_v42 = vsel %vm147_vm7, -inf, %v283_v6 }
 0x27f   :  { %v153_v43 = vsel %vm105_vm1, %v149_v42, -inf }
 0x280   :  { %154 = vmax.xlane.f32.xlu1 %v153_v43 }
 0x305   :  { %v152_v44 = vpop.xlane.xlu0 %151 }
 0x306   :  { %vm156_vm10 = vcmp.eq.f32.partialorder %v148_v39, %v152_v44  ;;  %v195_v45 = vsel %vm194_vm8, %v108_v12, %v152_v44 }
 0x307   :  { %v158_v46 = vsel %vm156_vm10, %v363_v11, 8  ;;  %v200_v47 = vsel %vm199_vm9, %v195_v45, -inf }
 0x308   :  { %201 = vmax.xlane.f32.xlu0 %v200_v47  ;;  %v160_v48 = vsel %vm105_vm1, %v158_v46, 2147483647 }
 0x309   :  { %v155_v49 = vpop.xlane.xlu1 %154  ;;  %v162_v50 = vshra.s32 %v160_v48, 16  ;;  %v161_v60 = vand.u32 65535, %v160_v48 }
 0x30a   :  { %vm157_vm11 = vcmp.eq.f32.partialorder %v149_v42, %v155_v49  ;;  %v196_v51 = vsel %vm194_vm8, %v111_v15, %v155_v49 }
 0x30b   :  { %v159_v52 = vsel %vm157_vm11, %v363_v11, 8  ;;  %v203_v53 = vsel %vm199_vm9, %v196_v51, -inf  ;;  %v164_v54 = vcvt.s32.f32 %v162_v50  ;;  %v163_v1 = vcvt.s32.f32 %v161_v60 }
 0x30c   :  { %204 = vmax.xlane.f32.xlu1 %v203_v53  ;;  %v175_v55 = vsel %vm105_vm1, %v159_v52, 2147483647 }
 0x30d   :  { %165 = vmin.xlane.f32.xlu0 %v164_v54  ;;  %v177_v56 = vshra.s32 %v175_v55, 16  ;;  %v176_v2 = vand.u32 65535, %v175_v55 }
 0x30f   :  { %v179_v57 = vcvt.s32.f32 %v177_v56  ;;  %v178_v6 = vcvt.s32.f32 %v176_v2 }
 0x311   :  { %180 = vmin.xlane.f32.xlu1 %v179_v57 }
 0x391   :  { %v202_v58 = vpop.xlane.xlu0 %201 }
 0x392   :  { %v206_v59 = vsub.f32 %v195_v45, %v202_v58 }
 0x394   :  { %v208_v61 = vmul.f32 1.442695, %v206_v59 }
 0x395   :  { %v205_v62 = vpop.xlane.xlu1 %204 }
 0x396   :  { %286 = vpow2.f32 %v208_v61  ;;  %v207_v63 = vsub.f32 %v196_v51, %v205_v62  ;;  %v166_v0 = vpop.xlane.xlu0 %165 }
 0x397   :  { %vm167_vm12 = vcmp.eq.f32.partialorder %v164_v54, %v166_v0  ;;  %v172_v13 = vcvt.f32.s32 %v166_v0 }
 0x398   :  { %v210_v3 = vmul.f32 1.442695, %v207_v63  ;;  %v168_v4 = vsel %vm167_vm12, %v163_v1, inf }
 0x399   :  { %169 = vmin.xlane.f32.xlu0 %v168_v4  ;;  %v173_v15 = vshll.u32 %v172_v13, 16 }
 0x39a   :  { %288 = vpow2.f32 %v210_v3  ;;  %v181_v5 = vpop.xlane.xlu1 %180 }
 0x39b   :  { %vm182_vm13 = vcmp.eq.f32.partialorder %v179_v57, %v181_v5  ;;  %v187_v16 = vcvt.f32.s32 %v181_v5 }
 0x39c   :  { %v183_v7 = vsel %vm182_vm13, %v178_v6, inf }
 0x39d   :  { %184 = vmin.xlane.f32.xlu1 %v183_v7  ;;  %v188_v20 = vshll.u32 %v187_v16, 16 }
 0x3a3   :  { %v287_v8 = vpop.eup %286 }
 0x3a4   :  { %v212_v9 = vsel %vm199_vm9, %v287_v8, 0.0 }
 0x3a5   :  { %213 = vadd.xlane.f32.xlu0 %v212_v9 }
 0x3a7   :  { %v289_v10 = vpop.eup %288 }
 0x3a8   :  { %v215_v12 = vsel %vm199_vm9, %v289_v10, 0.0 }
 0x3a9   :  { %216 = vadd.xlane.f32.xlu1 %v215_v12 }
 0x422   :  { %v170_v14 = vpop.xlane.xlu0 %169 }
 0x423   :  { %v171_v17 = vcvt.f32.s32 %v170_v14 }
 0x425   :  { %v174_v18 = vadd.s32 %v173_v15, %v171_v17 }
 0x426   :  { %v185_v19 = vpop.xlane.xlu1 %184 }
 0x427   :  { %vm190_vm14 = vcmp.eq.s32.totalorder %v363_v11, %v174_v18  ;;  %v197_v21 = vsel %vm194_vm8, %v369_v35, %v174_v18  ;;  %v186_v22 = vcvt.f32.s32 %v185_v19 }
 0x428   :  { %vm192_vm15 = vmor %vm146_vm6, %vm190_vm14  ;;  %224 = vst.msk [vmem:[%s431_s3] sm:$0xff] %vm199_vm9, %v197_v21 }
 0x429   :  { %v189_v23 = vadd.s32 %v188_v20, %v186_v22  ;;  %v265_v25 = vsel %vm192_vm15, 1.0, %v316_v24 }
 0x42a   :  { %v230_v28 = vsel %vm105_vm1, %v265_v25, 0.0 }
 0x42b   :  { %vm191_vm0 = vcmp.eq.s32.totalorder %v363_v11, %v189_v23  ;;  %v198_v26 = vsel %vm194_vm8, %v376_v40, %v189_v23 }
 0x42c   :  { %vm193_vm2 = vmor %vm147_vm7, %vm191_vm0  ;;  %225 = vst.msk [vmem:[%s431_s3 + $0x8] sm:$0xff] %vm199_vm9, %v198_v26  ;;  %s294_s3 = scalar_lea.vmem %s252_s30, 16 }
 0x42d   :  { %v266_v27 = vsel %vm193_vm2, 1.0, %v316_v24  ;;  %p295_p0 = scmp.ne.s32.totalorder %s252_s30, %s294_s3  ;;  %p300_p2 = scmp.lt.s32.totalorder %s298_s5, %s294_s3 }
 0x42e   :  { %v231_v29 = vsel %vm105_vm1, %v266_v27, 0.0  ;;  %v214_v30 = vpop.xlane.xlu0 %213 }
 0x42f   :  { %v232_v31 = vadd.f32 %v231_v29, %v230_v28  ;;  %290 = vrcp.f32 %v214_v30  ;;  %p301_p3 = por %p300_p2, %p299_p1 }
 0x431   :  { %v233_v32 = vrot.slane %v232_v31, 4  ;;  %p302_p4 = pnand %p301_p3, %p295_p0 }
 0x432   :  { %v217_v33 = vpop.xlane.xlu1 %216 }
 0x433   :  { %292 = vrcp.f32 %v217_v33  ;;  %v234_v34 = vadd.f32 %v233_v32, %v232_v31 }
 0x435   :  { %v235_v35 = vrot.slane %v234_v34, 2 }
 0x437   :  { %v236_v11 = vadd.f32 %v235_v35, %v234_v34 }
 0x439   :  { %v237_v36 = vrot.slane %v236_v11, 1 }
 0x43b   :  { %v238_v37 = vadd.f32 %v237_v36, %v236_v11 }
 0x43c   :  { %v291_v38 = vpop.eup %290 }
 0x43d   :  { %v219_v39 = vmul.f32 %v291_v38, %v287_v8  ;;  %240 = vst.msk [vmem:[#allocation2] sm:$0x1] %vm239_vm3, %v238_v37 }
 0x43e   :  { %305 = shalt.err (!%p302_p4)
}
 0x43f   :  { %254 = dma.vmem_to_hbm [thread:$0]  %s252_s30, 16, %s432_s4, [#allocation3]   ;;  %222 = vst.msk [vmem:[%s430_s2] sm:$0xff] %vm199_vm9, %v219_v39 }
 0x440   :  { %v293_v40 = vpop.eup %292 }
 0x441   :  { %v221_v41 = vmul.f32 %v293_v40, %v289_v10 }
 0x443   :  { %223 = vst.msk [vmem:[%s430_s2 + $0x8] sm:$0xff] %vm199_vm9, %v221_v41 }
 0x444   :  { %314 = dma.done.wait [#allocation3], 16  }
 0x445   :  { %315 = vsyncadd [#allocation3], 4294967280 }
 0x446   :  { %262 = vsyncpa [#allocation3], 1 }

// kernel: tpu_custom_call.1
= control target key start
LH: loop header
LB: loop body
LE: loop exit
PB: predicated region body
PF: predicated region fallthrough
CT: control target
= control target key end

     0   :  { %vm21_vm0 = vcmask 261120   ;;  %s428_s0 = inlined_call_operand.vmem [shape: f32[16,32], index: 0, kind: input, shape index: {}]   ;;  %s429_s1 = inlined_call_operand.vmem [shape: f32[32,8], index: 1, kind: input, shape index: {}]   ;;  %s430_s2 = inlined_call_operand.vmem [shape: f32[16,2], index: 2, kind: output, shape index: {0}]   ;;  %s431_s3 = inlined_call_operand.vmem [shape: s32[16,2], index: 3, kind: output, shape index: {1}]   ;;  %s432_s4 = inlined_call_operand.hbm [shape: f32[1,1,8], index: 4, kind: output, shape index: {2}]  }
   0x1   :  { %v20_v0 = vld [vmem:[%s429_s1 + $0x18] sm:$0xff]  ;;  %v19_v1 = vld [vmem:[%s429_s1 + $0x10] sm:$0xff]  ;;  %v15_v2 = vld [vmem:[%s428_s0] sm:$0xff] }
   0x2   :  { %273 = vmatprep.subr.mxu0 %v20_v0  ;;  %v18_v3 = vld [vmem:[%s429_s1 + $0x8] sm:$0xff]  ;;  %281 = vmatprep.mubr.msk.f32.mxu0 %vm21_vm0, %v15_v2 }
   0x3   :  { %274 = vmatpush3.msra.mxu0 %v20_v0 }
   0x4   :  { %10 = vsyncpa [#allocation3], 0  ;;  %275 = vmatprep.subr.mxu0 %v19_v1  ;;  %v17_v4 = vld [vmem:[%s429_s1] sm:$0xff]  ;;  %v16_v5 = vld [vmem:[%s428_s0 + $0x8] sm:$0xff]  ;;  %vm105_vm1 = vcmask 64512   ;;  %v103_v10 = vlaneseq  ;;  %vm194_vm8 = vcmask 7168  }
   0x5   :  { %276 = vmatpush3.msra.mxu0 %v19_v1  ;;  %vm199_vm9 = vcmask 15360   ;;  %s317_s29 = smov [#allocation2]  }
   0x6   :  { %277 = vmatprep.subr.mxu0 %v18_v3  ;;  %v363_v11 = vand.u32 127, %v103_v10  ;;  %s251_s30 = sshll.u32 %s317_s29, 4  ;;  %s252_s30 = int_to_ptr.vmem [resolvable:$true] %s251_s30 }
   0x7   :  { %278 = vmatpush3.msra.mxu0 %v18_v3  ;;  %s298_s5 = scalar_lea.vmem %s252_s30, 32  ;;  %p299_p1 = scmp.lt.s32.totalorder %s252_s30, %s252_s30 }
   0x8   :  { %279 = vmatprep.subr.mxu0 %v17_v4 }
   0x9   :  { %280 = vmatpush3.msra.mxu0 %v17_v4 }
   0xa   :  { %282 = vmatmul.mubr.msk.f32.vlgmr.msra.gmra.mxu0 %vm21_vm0, %v16_v5 }
  0xca   :  { %v283_v6 = vpop.f32.mrf.mxu0 }
  0xcb   :  { %v109_v9 = vsel %vm105_vm1, %v283_v6, -inf }
  0xcc   :  { %v94_v7 = vpop.f32.mrf.mxu0 }
  0xcd   :  { %v106_v8 = vsel %vm105_vm1, %v94_v7, -inf }
  0xce   :  { %107 = vmax.xlane.f32.xlu0 %v106_v8 }
  0xd2   :  { %110 = vmax.xlane.f32.xlu0 %v109_v9 }
 0x157   :  { %v108_v12 = vpop.xlane.xlu0 %107 }
 0x158   :  { %vm112_vm2 = vcmp.eq.f32.partialorder %v94_v7, %v108_v12 }
 0x159   :  { %v114_v13 = vsel %vm112_vm2, %v363_v11, 8 }
 0x15a   :  { %v116_v14 = vsel %vm105_vm1, %v114_v13, 2147483647 }
 0x15b   :  { %v111_v15 = vpop.xlane.xlu0 %110  ;;  %v118_v16 = vshra.s32 %v116_v14, 16  ;;  %v117_v22 = vand.u32 65535, %v116_v14 }
 0x15c   :  { %vm113_vm3 = vcmp.eq.f32.partialorder %v283_v6, %v111_v15 }
 0x15d   :  { %v115_v17 = vsel %vm113_vm3, %v363_v11, 8  ;;  %v120_v18 = vcvt.s32.f32 %v118_v16  ;;  %v119_v24 = vcvt.s32.f32 %v117_v22  ;;  %vm239_vm3 = vcmask 57344  }
 0x15e   :  { %v131_v19 = vsel %vm105_vm1, %v115_v17, 2147483647 }
 0x15f   :  { %121 = vmin.xlane.f32.xlu1 %v120_v18  ;;  %v133_v20 = vshra.s32 %v131_v19, 16  ;;  %v132_v25 = vand.u32 65535, %v131_v19 }
 0x161   :  { %v135_v21 = vcvt.s32.f32 %v133_v20  ;;  %v134_v28 = vcvt.s32.f32 %v132_v25 }
 0x163   :  { %136 = vmin.xlane.f32.xlu1 %v135_v21 }
 0x1e8   :  { %v122_v23 = vpop.xlane.xlu1 %121 }
 0x1e9   :  { %vm123_vm4 = vcmp.eq.f32.partialorder %v120_v18, %v122_v23  ;;  %v128_v30 = vcvt.f32.s32 %v122_v23 }
 0x1ea   :  { %v124_v26 = vsel %vm123_vm4, %v119_v24, inf  ;;  %v316_v24 = vmov 0.0  }
 0x1eb   :  { %125 = vmin.xlane.f32.xlu0 %v124_v26  ;;  %v129_v32 = vshll.u32 %v128_v30, 16 }
 0x1ec   :  { %v137_v27 = vpop.xlane.xlu1 %136 }
 0x1ed   :  { %vm138_vm5 = vcmp.eq.f32.partialorder %v135_v21, %v137_v27  ;;  %v143_v33 = vcvt.f32.s32 %v137_v27 }
 0x1ee   :  { %v139_v29 = vsel %vm138_vm5, %v134_v28, inf }
 0x1ef   :  { %140 = vmin.xlane.f32.xlu1 %v139_v29  ;;  %v144_v37 = vshll.u32 %v143_v33, 16 }
 0x274   :  { %v126_v31 = vpop.xlane.xlu0 %125 }
 0x275   :  { %v127_v34 = vcvt.f32.s32 %v126_v31 }
 0x277   :  { %v369_v35 = vadd.s32 %v129_v32, %v127_v34 }
 0x278   :  { %v141_v36 = vpop.xlane.xlu1 %140 }
 0x279   :  { %v142_v38 = vcvt.f32.s32 %v141_v36  ;;  %vm146_vm6 = vcmp.eq.s32.totalorder %v363_v11, %v369_v35 }
 0x27a   :  { %v148_v39 = vsel %vm146_vm6, -inf, %v94_v7 }
 0x27b   :  { %v376_v40 = vadd.s32 %v144_v37, %v142_v38  ;;  %v150_v41 = vsel %vm105_vm1, %v148_v39, -inf }
 0x27c   :  { %151 = vmax.xlane.f32.xlu0 %v150_v41 }
 0x27d   :  { %vm147_vm7 = vcmp.eq.s32.totalorder %v363_v11, %v376_v40 }
 0x27e   :  { %v149_v42 = vsel %vm147_vm7, -inf, %v283_v6 }
 0x27f   :  { %v153_v43 = vsel %vm105_vm1, %v149_v42, -inf }
 0x280   :  { %154 = vmax.xlane.f32.xlu1 %v153_v43 }
 0x305   :  { %v152_v44 = vpop.xlane.xlu0 %151 }
 0x306   :  { %vm156_vm10 = vcmp.eq.f32.partialorder %v148_v39, %v152_v44  ;;  %v195_v45 = vsel %vm194_vm8, %v108_v12, %v152_v44 }
 0x307   :  { %v158_v46 = vsel %vm156_vm10, %v363_v11, 8  ;;  %v200_v47 = vsel %vm199_vm9, %v195_v45, -inf }
 0x308   :  { %201 = vmax.xlane.f32.xlu0 %v200_v47  ;;  %v160_v48 = vsel %vm105_vm1, %v158_v46, 2147483647 }
 0x309   :  { %v155_v49 = vpop.xlane.xlu1 %154  ;;  %v162_v50 = vshra.s32 %v160_v48, 16  ;;  %v161_v60 = vand.u32 65535, %v160_v48 }
 0x30a   :  { %vm157_vm11 = vcmp.eq.f32.partialorder %v149_v42, %v155_v49  ;;  %v196_v51 = vsel %vm194_vm8, %v111_v15, %v155_v49 }
 0x30b   :  { %v159_v52 = vsel %vm157_vm11, %v363_v11, 8  ;;  %v203_v53 = vsel %vm199_vm9, %v196_v51, -inf  ;;  %v164_v54 = vcvt.s32.f32 %v162_v50  ;;  %v163_v1 = vcvt.s32.f32 %v161_v60 }
 0x30c   :  { %204 = vmax.xlane.f32.xlu1 %v203_v53  ;;  %v175_v55 = vsel %vm105_vm1, %v159_v52, 2147483647 }
 0x30d   :  { %165 = vmin.xlane.f32.xlu0 %v164_v54  ;;  %v177_v56 = vshra.s32 %v175_v55, 16  ;;  %v176_v2 = vand.u32 65535, %v175_v55 }
 0x30f   :  { %v179_v57 = vcvt.s32.f32 %v177_v56  ;;  %v178_v6 = vcvt.s32.f32 %v176_v2 }
 0x311   :  { %180 = vmin.xlane.f32.xlu1 %v179_v57 }
 0x391   :  { %v202_v58 = vpop.xlane.xlu0 %201 }
 0x392   :  { %v206_v59 = vsub.f32 %v195_v45, %v202_v58 }
 0x394   :  { %v208_v61 = vmul.f32 1.442695, %v206_v59 }
 0x395   :  { %v205_v62 = vpop.xlane.xlu1 %204 }
 0x396   :  { %286 = vpow2.f32 %v208_v61  ;;  %v207_v63 = vsub.f32 %v196_v51, %v205_v62  ;;  %v166_v0 = vpop.xlane.xlu0 %165 }
 0x397   :  { %vm167_vm12 = vcmp.eq.f32.partialorder %v164_v54, %v166_v0  ;;  %v172_v13 = vcvt.f32.s32 %v166_v0 }
 0x398   :  { %v210_v3 = vmul.f32 1.442695, %v207_v63  ;;  %v168_v4 = vsel %vm167_vm12, %v163_v1, inf }
 0x399   :  { %169 = vmin.xlane.f32.xlu0 %v168_v4  ;;  %v173_v15 = vshll.u32 %v172_v13, 16 }
 0x39a   :  { %288 = vpow2.f32 %v210_v3  ;;  %v181_v5 = vpop.xlane.xlu1 %180 }
 0x39b   :  { %vm182_vm13 = vcmp.eq.f32.partialorder %v179_v57, %v181_v5  ;;  %v187_v16 = vcvt.f32.s32 %v181_v5 }
 0x39c   :  { %v183_v7 = vsel %vm182_vm13, %v178_v6, inf }
 0x39d   :  { %184 = vmin.xlane.f32.xlu1 %v183_v7  ;;  %v188_v20 = vshll.u32 %v187_v16, 16 }
 0x3a3   :  { %v287_v8 = vpop.eup %286 }
 0x3a4   :  { %v212_v9 = vsel %vm199_vm9, %v287_v8, 0.0 }
 0x3a5   :  { %213 = vadd.xlane.f32.xlu0 %v212_v9 }
 0x3a7   :  { %v289_v10 = vpop.eup %288 }
 0x3a8   :  { %v215_v12 = vsel %vm199_vm9, %v289_v10, 0.0 }
 0x3a9   :  { %216 = vadd.xlane.f32.xlu1 %v215_v12 }
 0x422   :  { %v170_v14 = vpop.xlane.xlu0 %169 }
 0x423   :  { %v171_v17 = vcvt.f32.s32 %v170_v14 }
 0x425   :  { %v174_v18 = vadd.s32 %v173_v15, %v171_v17 }
 0x426   :  { %v185_v19 = vpop.xlane.xlu1 %184 }
 0x427   :  { %vm190_vm14 = vcmp.eq.s32.totalorder %v363_v11, %v174_v18  ;;  %v197_v21 = vsel %vm194_vm8, %v369_v35, %v174_v18  ;;  %v186_v22 = vcvt.f32.s32 %v185_v19 }
 0x428   :  { %vm192_vm15 = vmor %vm146_vm6, %vm190_vm14  ;;  %224 = vst.msk [vmem:[%s431_s3] sm:$0xff] %vm199_vm9, %v197_v21 }
 0x429   :  { %v189_v23 = vadd.s32 %v188_v20, %v186_v22  ;;  %v265_v25 = vsel %vm192_vm15, 1.0, %v316_v24 }
 0x42a   :  { %v230_v28 = vsel %vm105_vm1, %v265_v25, 0.0 }
 0x42b   :  { %vm191_vm0 = vcmp.eq.s32.totalorder %v363_v11, %v189_v23  ;;  %v198_v26 = vsel %vm194_vm8, %v376_v40, %v189_v23 }
 0x42c   :  { %vm193_vm2 = vmor %vm147_vm7, %vm191_vm0  ;;  %225 = vst.msk [vmem:[%s431_s3 + $0x8] sm:$0xff] %vm199_vm9, %v198_v26  ;;  %s294_s3 = scalar_lea.vmem %s252_s30, 16 }
 0x42d   :  { %v266_v27 = vsel %vm193_vm2, 1.0, %v316_v24  ;;  %p295_p0 = scmp.ne.s32.totalorder %s252_s30, %s294_s3  ;;  %p300_p2 = scmp.lt.s32.totalorder %s298_s5, %s294_s3 }
 0x42e   :  { %v231_v29 = vsel %vm105_vm1, %v266_v27, 0.0  ;;  %v214_v30 = vpop.xlane.xlu0 %213 }
 0x42f   :  { %v232_v31 = vadd.f32 %v231_v29, %v230_v28  ;;  %290 = vrcp.f32 %v214_v30  ;;  %p301_p3 = por %p300_p2, %p299_p1 }
 0x431   :  { %v233_v32 = vrot.slane %v232_v31, 4  ;;  %p302_p4 = pnand %p301_p3, %p295_p0 }
 0x432   :  { %v217_v33 = vpop.xlane.xlu1 %216 }
 0x433   :  { %292 = vrcp.f32 %v217_v33  ;;  %v234_v34 = vadd.f32 %v233_v32, %v232_v31 }
 0x435   :  { %v235_v35 = vrot.slane %v234_v34, 2 }
 0x437   :  { %v236_v11 = vadd.f32 %v235_v35, %v234_v34 }
 0x439   :  { %v237_v36 = vrot.slane %v236_v11, 1 }
 0x43b   :  { %v238_v37 = vadd.f32 %v237_v36, %v236_v11 }
 0x43c   :  { %v291_v38 = vpop.eup %290 }
 0x43d   :  { %v219_v39 = vmul.f32 %v291_v38, %v287_v8  ;;  %240 = vst.msk [vmem:[#allocation2] sm:$0x1] %vm239_vm3, %v238_v37 }
 0x43e   :  { %305 = shalt.err (!%p302_p4)
}
 0x43f   :  { %254 = dma.vmem_to_hbm [thread:$0]  %s252_s30, 16, %s432_s4, [#allocation3]   ;;  %222 = vst.msk [vmem:[%s430_s2] sm:$0xff] %vm199_vm9, %v219_v39 }
 0x440   :  { %v293_v40 = vpop.eup %292 }
 0x441   :  { %v221_v41 = vmul.f32 %v293_v40, %v289_v10 }
 0x443   :  { %223 = vst.msk [vmem:[%s430_s2 + $0x8] sm:$0xff] %vm199_vm9, %v221_v41 }
 0x444   :  { %314 = dma.done.wait [#allocation3], 16  }
 0x445   :  { %315 = vsyncadd [#allocation3], 4294967280 }
 0x446   :  { %262 = vsyncpa [#allocation3], 1 }

</bundles_post_ra>
